<compile_context>
chip_gen: v7x
topology: tpu7x:2x2x1
jax: 0.10.0
libtpu: 0.0.40
codegen_flags: <defaults>
</compile_context>

<pallas_src>
import jax
import jax.numpy as jnp
from jax.experimental import pallas as pl
from jax.experimental.pallas import tpu as pltpu


# ----------------------------------------------------------------------------
# Kernel: full MLP forward on one batch tile.  All layers fused in one body.
# refs layout: (x_ref, w0, b0, w1, b1, ..., wL-1, bL-1, o_ref)
# ----------------------------------------------------------------------------
def _make_mlp_kernel(num_layers):
    def kernel(*refs):
        x_ref = refs[0]
        o_ref = refs[-1]
        wb = refs[1:-1]

        h = x_ref[...].astype(jnp.float32)
        for li in range(num_layers):
            w = wb[2 * li][...]
            b = wb[2 * li + 1][...]
            h = jnp.dot(h, w, preferred_element_type=jnp.float32) + b
            if li < num_layers - 1:          # SiLU on hidden layers only
                h = h * jax.nn.sigmoid(h)
        o_ref[...] = h.astype(o_ref.dtype)

    return kernel


# ----------------------------------------------------------------------------
# Wrapper: single pallas_call for the entire MLP.
#   x:       (N, indim)
#   weights: list of (d_in_i, d_out_i) matrices   (layer i: h @ W_i + b_i)
#   biases:  list of (d_out_i,) vectors
# ----------------------------------------------------------------------------
def mlp_forward(x, weights, biases, *, max_tile_n=256):
    assert len(weights) == len(biases) and len(weights) >= 1
    num_layers = len(weights)
    N, indim = x.shape
    outdim = weights[-1].shape[1]

    # Tile sizing: one tile for small N (latency / launch bound); otherwise
    # cap at max_tile_n rows (multiple of 8 sublanes) and pad the tail.
    if N <= max_tile_n:
        tile_n = N
        n_pad = N
    else:
        tile_n = max_tile_n
        n_pad = pl.cdiv(N, tile_n) * tile_n

    x_p = x if n_pad == N else jnp.pad(x, ((0, n_pad - N), (0, 0)))
    grid = (n_pad // tile_n,)

    wb_args = []
    wb_specs = []
    for w, b in zip(weights, biases):
        b2 = jnp.asarray(b, jnp.float32).reshape(1, -1)
        w = jnp.asarray(w, jnp.float32)
        wb_args.extend([w, b2])
        # Weights/biases are grid-invariant: constant block index keeps them
        # resident in VMEM (no re-DMA per step, no extra buffering needed).
        wb_specs.append(pl.BlockSpec(w.shape, lambda i: (0, 0)))
        wb_specs.append(pl.BlockSpec(b2.shape, lambda i: (0, 0)))

    out = pl.pallas_call(
        _make_mlp_kernel(num_layers),
        out_shape=jax.ShapeDtypeStruct((n_pad, outdim), x.dtype),
        grid=grid,
        in_specs=[pl.BlockSpec((tile_n, indim), lambda i: (i, 0))] + wb_specs,
        out_specs=pl.BlockSpec((tile_n, outdim), lambda i: (i, 0)),
        compiler_params=pltpu.CompilerParams(
            dimension_semantics=("parallel",)),
    )(x_p, *wb_args)

    return out[:N] if n_pad != N else out


# ----------------------------------------------------------------------------
# Pure-JAX reference (mirrors the PyTorch MLP forward exactly)
# ----------------------------------------------------------------------------
def _reference_mlp(x, weights, biases):
    h = x
    n = len(weights)
    for i, (w, b) in enumerate(zip(weights, biases)):
        h = h @ w + b.reshape(1, -1)
        if i < n - 1:
            h = h * jax.nn.sigmoid(h)   # SiLU
    return h


if __name__ == "__main__":
    # Shapes consistent with the module: indim=16, hdim=32, outdim=8,
    # num_hidden=2  ->  layers: (16->32 SiLU), (32->32 SiLU), (32->8).
    indim, hdim, outdim, num_hidden = 16, 32, 8, 2

    key = jax.random.PRNGKey(0)
    ks = jax.random.split(key, 2 * (num_hidden + 1) + 2)

    dims = [indim] + [hdim] * num_hidden + [outdim]
    weights, biases = [], []
    for li in range(num_hidden + 1):
        kw, kb = ks[2 * li], ks[2 * li + 1]
        weights.append(0.2 * jax.random.normal(kw, (dims[li], dims[li + 1]),
                                               jnp.float32))
        biases.append(0.2 * jax.random.normal(kb, (dims[li + 1],), jnp.float32))

    # Case 1: small batch -> single tile, grid=(1,)
    N1 = 128
    x1 = jax.random.normal(ks[-2], (N1, indim), jnp.float32)
    y1 = jax.block_until_ready(mlp_forward(x1, weights, biases))
    ref1 = _reference_mlp(x1, weights, biases)
    assert y1.shape == (N1, outdim)
    assert jnp.allclose(y1, ref1, rtol=1e-5, atol=1e-5), "mismatch (case 1)"

    # Case 2: batch not divisible by the tile -> padding + multi-step grid
    N2 = 300
    x2 = jax.random.normal(ks[-1], (N2, indim), jnp.float32)
    y2 = jax.block_until_ready(mlp_forward(x2, weights, biases, max_tile_n=128))
    ref2 = _reference_mlp(x2, weights, biases)
    assert y2.shape == (N2, outdim)
    assert jnp.allclose(y2, ref2, rtol=1e-5, atol=1e-5), "mismatch (case 2)"

    print("KERNEL_OK")
</pallas_src>

<mosaic_0001>
module attributes {stable_mosaic.version = 11 : i64} {
  func.func @kernel(%arg0: i32, %arg1: memref<128x16xf32, #tpu.memory_space<vmem>>, %arg2: memref<16x32xf32, #tpu.memory_space<vmem>>, %arg3: memref<1x32xf32, #tpu.memory_space<vmem>>, %arg4: memref<32x32xf32, #tpu.memory_space<vmem>>, %arg5: memref<1x32xf32, #tpu.memory_space<vmem>>, %arg6: memref<32x8xf32, #tpu.memory_space<vmem>>, %arg7: memref<1x8xf32, #tpu.memory_space<vmem>>, %arg8: memref<128x8xf32, #tpu.memory_space<vmem>>) attributes {dimension_semantics = [#tpu.dimension_semantics<parallel>], iteration_bounds = array<i64: 1>, scalar_prefetch = 0 : i64, scratch_operands = 0 : i64, tpu.core_type = #tpu.core_type<tc>, window_params = [{transform_indices = @transform_0, window_bounds = array<i64: 128, 16>}, {pipeline_mode = #tpu.pipeline_mode<synchronous>, transform_indices = @transform_1, window_bounds = array<i64: 16, 32>}, {pipeline_mode = #tpu.pipeline_mode<synchronous>, transform_indices = @transform_2, window_bounds = array<i64: 1, 32>}, {pipeline_mode = #tpu.pipeline_mode<synchronous>, transform_indices = @transform_3, window_bounds = array<i64: 32, 32>}, {pipeline_mode = #tpu.pipeline_mode<synchronous>, transform_indices = @transform_4, window_bounds = array<i64: 1, 32>}, {pipeline_mode = #tpu.pipeline_mode<synchronous>, transform_indices = @transform_5, window_bounds = array<i64: 32, 8>}, {pipeline_mode = #tpu.pipeline_mode<synchronous>, transform_indices = @transform_6, window_bounds = array<i64: 1, 8>}, {transform_indices = @transform_7, window_bounds = array<i64: 128, 8>}]} {
    %c0 = arith.constant 0 : index
    %c0_0 = arith.constant 0 : index
    %0 = vector.load %arg1[%c0, %c0_0] : memref<128x16xf32, #tpu.memory_space<vmem>>, vector<128x16xf32>
    %c0_1 = arith.constant 0 : index
    %c0_2 = arith.constant 0 : index
    %1 = vector.load %arg2[%c0_1, %c0_2] : memref<16x32xf32, #tpu.memory_space<vmem>>, vector<16x32xf32>
    %c0_3 = arith.constant 0 : index
    %c0_4 = arith.constant 0 : index
    %2 = vector.load %arg3[%c0_3, %c0_4] : memref<1x32xf32, #tpu.memory_space<vmem>>, vector<1x32xf32>
    %cst = arith.constant dense<0.000000e+00> : vector<128x32xf32>
    %3 = tpu.matmul %0, %1, %cst {dimension_numbers = #tpu.dot_dimension_numbers<[1], [0], [0], [1], [0, 0, 1, 1], [], []>} : vector<128x16xf32>, vector<16x32xf32>, vector<128x32xf32> -> vector<128x32xf32>
    %4 = vector.broadcast %2 : vector<1x32xf32> to vector<128x32xf32>
    %5 = arith.addf %3, %4 : vector<128x32xf32>
    %6 = arith.negf %5 : vector<128x32xf32>
    %7 = math.exp %6 : vector<128x32xf32>
    %cst_5 = arith.constant 1.000000e+00 : f32
    %8 = vector.broadcast %cst_5 : f32 to vector<128x32xf32>
    %9 = arith.addf %8, %7 : vector<128x32xf32>
    %10 = arith.divf %8, %9 : vector<128x32xf32>
    %11 = arith.mulf %5, %10 : vector<128x32xf32>
    %c0_6 = arith.constant 0 : index
    %c0_7 = arith.constant 0 : index
    %12 = vector.load %arg4[%c0_6, %c0_7] : memref<32x32xf32, #tpu.memory_space<vmem>>, vector<32x32xf32>
    %c0_8 = arith.constant 0 : index
    %c0_9 = arith.constant 0 : index
    %13 = vector.load %arg5[%c0_8, %c0_9] : memref<1x32xf32, #tpu.memory_space<vmem>>, vector<1x32xf32>
    %cst_10 = arith.constant dense<0.000000e+00> : vector<128x32xf32>
    %14 = tpu.matmul %11, %12, %cst_10 {dimension_numbers = #tpu.dot_dimension_numbers<[1], [0], [0], [1], [0, 0, 1, 1], [], []>} : vector<128x32xf32>, vector<32x32xf32>, vector<128x32xf32> -> vector<128x32xf32>
    %15 = vector.broadcast %13 : vector<1x32xf32> to vector<128x32xf32>
    %16 = arith.addf %14, %15 : vector<128x32xf32>
    %17 = arith.negf %16 : vector<128x32xf32>
    %18 = math.exp %17 : vector<128x32xf32>
    %cst_11 = arith.constant 1.000000e+00 : f32
    %19 = vector.broadcast %cst_11 : f32 to vector<128x32xf32>
    %20 = arith.addf %19, %18 : vector<128x32xf32>
    %21 = arith.divf %19, %20 : vector<128x32xf32>
    %22 = arith.mulf %16, %21 : vector<128x32xf32>
    %c0_12 = arith.constant 0 : index
    %c0_13 = arith.constant 0 : index
    %23 = vector.load %arg6[%c0_12, %c0_13] : memref<32x8xf32, #tpu.memory_space<vmem>>, vector<32x8xf32>
    %c0_14 = arith.constant 0 : index
    %c0_15 = arith.constant 0 : index
    %24 = vector.load %arg7[%c0_14, %c0_15] : memref<1x8xf32, #tpu.memory_space<vmem>>, vector<1x8xf32>
    %cst_16 = arith.constant dense<0.000000e+00> : vector<128x8xf32>
    %25 = tpu.matmul %22, %23, %cst_16 {dimension_numbers = #tpu.dot_dimension_numbers<[1], [0], [0], [1], [0, 0, 1, 1], [], []>} : vector<128x32xf32>, vector<32x8xf32>, vector<128x8xf32> -> vector<128x8xf32>
    %26 = vector.broadcast %24 : vector<1x8xf32> to vector<128x8xf32>
    %27 = arith.addf %25, %26 : vector<128x8xf32>
    %c0_17 = arith.constant 0 : index
    %c0_18 = arith.constant 0 : index
    %28 = vector.load %arg8[%c0_17, %c0_18] : memref<128x8xf32, #tpu.memory_space<vmem>>, vector<128x8xf32>
    tpu.vector_store %arg8[%c0_17, %c0_18], %27 {strides = array<i32>} : memref<128x8xf32, #tpu.memory_space<vmem>>, vector<128x8xf32>,
    return
  }
  func.func @transform_0(%arg0: i32) -> (i32, i32) {
    %c0_i32 = arith.constant 0 : i32
    %c0_i32_0 = arith.constant 0 : i32
    return %arg0, %c0_i32 : i32, i32
  }
  func.func @transform_1(%arg0: i32) -> (i32, i32) {
    %c0_i32 = arith.constant 0 : i32
    %c0_i32_0 = arith.constant 0 : i32
    %c0_i32_1 = arith.constant 0 : i32
    return %c0_i32, %c0_i32_0 : i32, i32
  }
  func.func @transform_2(%arg0: i32) -> (i32, i32) {
    %c0_i32 = arith.constant 0 : i32
    %c0_i32_0 = arith.constant 0 : i32
    %c0_i32_1 = arith.constant 0 : i32
    return %c0_i32, %c0_i32_0 : i32, i32
  }
  func.func @transform_3(%arg0: i32) -> (i32, i32) {
    %c0_i32 = arith.constant 0 : i32
    %c0_i32_0 = arith.constant 0 : i32
    %c0_i32_1 = arith.constant 0 : i32
    return %c0_i32, %c0_i32_0 : i32, i32
  }
  func.func @transform_4(%arg0: i32) -> (i32, i32) {
    %c0_i32 = arith.constant 0 : i32
    %c0_i32_0 = arith.constant 0 : i32
    %c0_i32_1 = arith.constant 0 : i32
    return %c0_i32, %c0_i32_0 : i32, i32
  }
  func.func @transform_5(%arg0: i32) -> (i32, i32) {
    %c0_i32 = arith.constant 0 : i32
    %c0_i32_0 = arith.constant 0 : i32
    %c0_i32_1 = arith.constant 0 : i32
    return %c0_i32, %c0_i32_0 : i32, i32
  }
  func.func @transform_6(%arg0: i32) -> (i32, i32) {
    %c0_i32 = arith.constant 0 : i32
    %c0_i32_0 = arith.constant 0 : i32
    %c0_i32_1 = arith.constant 0 : i32
    return %c0_i32, %c0_i32_0 : i32, i32
  }
  func.func @transform_7(%arg0: i32) -> (i32, i32) {
    %c0_i32 = arith.constant 0 : i32
    %c0_i32_0 = arith.constant 0 : i32
    return %arg0, %c0_i32 : i32, i32
  }
}

</mosaic_0001>

<bundles_post_ra>
// kernel: tpu_custom_call.1
= control target key start
LH: loop header
LB: loop body
LE: loop exit
PB: predicated region body
PF: predicated region fallthrough
CT: control target
= control target key end

     0   :  { %vm51_vm0 = vcmask 130048   ;;  %vm368_vm1 = vcmask 261120   ;;  %vm878_vm2 = vcmask 64512   ;;  %s1657_s1 = inlined_call_operand.vmem [shape: f32[16,32], index: 1, kind: input, shape index: {}]   ;;  %s1658_s0 = inlined_call_operand.vmem [shape: f32[128,16], index: 0, kind: input, shape index: {}]   ;;  %s1659_s3 = inlined_call_operand.vmem [shape: f32[32,32], index: 3, kind: input, shape index: {}]   ;;  %s1660_s2 = inlined_call_operand.vmem [shape: f32[1,32], index: 2, kind: input, shape index: {}]   ;;  %s1661_s5 = inlined_call_operand.vmem [shape: f32[32,8], index: 5, kind: input, shape index: {}]   ;;  %s1662_s4 = inlined_call_operand.vmem [shape: f32[1,32], index: 4, kind: input, shape index: {}]   ;;  %s1663_s6 = inlined_call_operand.vmem [shape: f32[1,8], index: 6, kind: input, shape index: {}]   ;;  %s1664_s7 = inlined_call_operand.vmem [shape: f32[128,8], index: 7, kind: output, shape index: {}]  }
   0x1   :  { %v42_v0 = vld [vmem:[%s1657_s1] sm:$0xff]  ;;  %v43_v1 = vld [vmem:[%s1657_s1 + $0x8] sm:$0xff]  ;;  %v28_v7 = vld [vmem:[%s1658_s0 + $0x10] sm:$0xff] }
   0x2   :  { %v26_v2 = vld [vmem:[%s1658_s0] sm:$0xff]  ;;  %v1132_v3 = vpack.c.bf16 %v43_v1, %v42_v0  ;;  %v27_v5 = vld [vmem:[%s1658_s0 + $0x8] sm:$0xff]  ;;  %v36_v8 = vld [vmem:[%s1658_s0 + $0x50] sm:$0xff] }
   0x3   :  { %1044 = vmatprep.mubr.msk.f32.mxu0 %vm51_vm0, %v26_v2  ;;  %v34_v4 = vld [vmem:[%s1658_s0 + $0x40] sm:$0xff]  ;;  %v35_v6 = vld [vmem:[%s1658_s0 + $0x48] sm:$0xff]  ;;  %v29_v9 = vld [vmem:[%s1658_s0 + $0x18] sm:$0xff] }
   0x4   :  { %1056 = vmatprep.mubr.msk.f32.mxu1 %vm51_vm0, %v34_v4  ;;  %1133 = vmatprep.subr.bf16.mxu0 %v1132_v3  ;;  %v37_v10 = vld [vmem:[%s1658_s0 + $0x58] sm:$0xff]  ;;  %v30_v11 = vld [vmem:[%s1658_s0 + $0x20] sm:$0xff]  ;;  %v31_v13 = vld [vmem:[%s1658_s0 + $0x28] sm:$0xff] }
   0x5   :  { %1152 = vmatprep.subr.bf16.mxu1 %v1132_v3  ;;  %1135 = vmatpush3.bf16.msra.mxu0 %v1132_v3  ;;  %v38_v12 = vld [vmem:[%s1658_s0 + $0x60] sm:$0xff]  ;;  %v39_v14 = vld [vmem:[%s1658_s0 + $0x68] sm:$0xff]  ;;  %v32_v15 = vld [vmem:[%s1658_s0 + $0x30] sm:$0xff] }
   0x6   :  { %1153 = vmatpush3.bf16.msra.mxu1 %v1132_v3  ;;  %v40_v16 = vld [vmem:[%s1658_s0 + $0x70] sm:$0xff]  ;;  %v33_v17 = vld [vmem:[%s1658_s0 + $0x38] sm:$0xff]  ;;  %v357_v19 = vld [vmem:[%s1659_s3] sm:$0xff] }
   0x7   :  { %v41_v18 = vld [vmem:[%s1658_s0 + $0x78] sm:$0xff]  ;;  %v358_v20 = vld [vmem:[%s1659_s3 + $0x8] sm:$0xff]  ;;  %v359_v22 = vld [vmem:[%s1659_s3 + $0x10] sm:$0xff] }
   0x8   :  { %1045 = vmatmul.mubr.msk.f32.vlgmr.msra.gmra.mrb[0].mxu0 %vm51_vm0, %v27_v5  ;;  %v1136_v21 = vpack.c.bf16 %v358_v20, %v357_v19  ;;  %v360_v23 = vld [vmem:[%s1659_s3 + $0x18] sm:$0xff]  ;;  %v1407_v25 = vld [vmem:[%s1660_s2] ss:$0 sm:$0xff] }
   0x9   :  { %1057 = vmatmul.mubr.msk.f32.vlgmr.msra.gmra.mrb[0].mxu1 %vm51_vm0, %v35_v6  ;;  %1047 = vmatprep.mubr.msk.f32.mxu0 %vm51_vm0, %v28_v7  ;;  %v1140_v24 = vpack.c.bf16 %v360_v23, %v359_v22 }
   0xa   :  { %1059 = vmatprep.mubr.msk.f32.mxu1 %vm51_vm0, %v36_v8  ;;  %1137 = vmatprep.subr.bf16.mxu1 %v1136_v21 }
   0xb   :  { %1139 = vmatpush3.bf16.msra.mxu1 %v1136_v21 }
   0xc   :  { %1048 = vmatmul.mubr.msk.f32.gmra.mrb[2].mxu0 %vm51_vm0, %v29_v9  ;;  %1141 = vmatprep.subr.bf16.mxu1 %v1140_v24 }
   0xd   :  { %1060 = vmatmul.mubr.msk.f32.gmra.mrb[2].mxu1 %vm51_vm0, %v37_v10  ;;  %1050 = vmatprep.mubr.msk.f32.mxu0 %vm51_vm0, %v30_v11 }
   0xe   :  { %1062 = vmatprep.mubr.msk.f32.mxu1 %vm51_vm0, %v38_v12 }
   0xf   :  { %1143 = vmatpush3.bf16.msra.mxu1 %v1140_v24 }
  0x10   :  { %1051 = vmatmul.mubr.msk.f32.gmra.mrb[4].mxu0 %vm51_vm0, %v31_v13 }
  0x11   :  { %1063 = vmatmul.mubr.msk.f32.gmra.mrb[4].mxu1 %vm51_vm0, %v39_v14  ;;  %1053 = vmatprep.mubr.msk.f32.mxu0 %vm51_vm0, %v32_v15 }
  0x12   :  { %1065 = vmatprep.mubr.msk.f32.mxu1 %vm51_vm0, %v40_v16 }
  0x14   :  { %1054 = vmatmul.mubr.msk.f32.gmra.mrb[6].mxu0 %vm51_vm0, %v33_v17 }
  0x15   :  { %1066 = vmatmul.mubr.msk.f32.gmra.mrb[6].mxu1 %vm51_vm0, %v41_v18 }
  0xdb   :  { %v1046_v26 = vpop.f32.mrb[0].mxu0 }
  0xdc   :  { %v1058_v27 = vpop.f32.mrb[0].mxu1  ;;  %v1410_v28 = vadd.f32 %v1046_v26, %v1407_v25  ;;  %v166_v29 = vpop.f32.mrb[1].mxu0 }
  0xdd   :  { %v206_v30 = vpop.f32.mrb[1].mxu1  ;;  %v1413_v31 = vadd.f32 %v1407_v25, %v166_v29  ;;  %v1441_v0 = vadd.f32 %v1058_v27, %v1407_v25 }
  0xde   :  { %v917_v32 = vmul.f32 -1.442695, %v1410_v28  ;;  %v1434_v57 = vadd.f32 %v1407_v25, %v206_v30 }
  0xdf   :  { %v916_v33 = vmul.f32 -1.442695, %v1413_v31  ;;  %v1049_v34 = vpop.f32.mrb[2].mxu0  ;;  %v925_v8 = vmul.f32 -1.442695, %v1441_v0 }
  0xe0   :  { %v1061_v35 = vpop.f32.mrb[2].mxu1  ;;  %1154 = vpow2.f32 %v917_v32  ;;  %v1418_v36 = vadd.f32 %v1049_v34, %v1407_v25  ;;  %v176_v37 = vpop.f32.mrb[3].mxu0  ;;  %v924_v63 = vmul.f32 -1.442695, %v1434_v57 }
  0xe1   :  { %v216_v38 = vpop.f32.mrb[3].mxu1  ;;  %v1421_v39 = vadd.f32 %v1407_v25, %v176_v37  ;;  %1156 = vpow2.f32 %v916_v33  ;;  %v1452_v10 = vadd.f32 %v1061_v35, %v1407_v25 }
  0xe2   :  { %v919_v40 = vmul.f32 -1.442695, %v1418_v36  ;;  %v1445_v4 = vadd.f32 %v1407_v25, %v216_v38 }
  0xe3   :  { %v918_v41 = vmul.f32 -1.442695, %v1421_v39  ;;  %v1052_v42 = vpop.f32.mrb[4].mxu0  ;;  %v927_v17 = vmul.f32 -1.442695, %v1452_v10 }
  0xe4   :  { %v1064_v43 = vpop.f32.mrb[4].mxu1  ;;  %1158 = vpow2.f32 %v919_v40  ;;  %v1426_v44 = vadd.f32 %v1052_v42, %v1407_v25  ;;  %v186_v45 = vpop.f32.mrb[5].mxu0  ;;  %v926_v11 = vmul.f32 -1.442695, %v1445_v4 }
  0xe5   :  { %v226_v46 = vpop.f32.mrb[5].mxu1  ;;  %v1429_v47 = vadd.f32 %v1407_v25, %v186_v45  ;;  %1160 = vpow2.f32 %v918_v41  ;;  %v1462_v18 = vadd.f32 %v1064_v43, %v1407_v25 }
  0xe6   :  { %v921_v48 = vmul.f32 -1.442695, %v1426_v44  ;;  %v1456_v12 = vadd.f32 %v1407_v25, %v226_v46 }
  0xe7   :  { %v920_v49 = vmul.f32 -1.442695, %v1429_v47  ;;  %v1055_v50 = vpop.f32.mrb[6].mxu0  ;;  %v929_v27 = vmul.f32 -1.442695, %v1462_v18 }
  0xe8   :  { %v1067_v51 = vpop.f32.mrb[6].mxu1  ;;  %1162 = vpow2.f32 %v921_v48  ;;  %v196_v52 = vpop.f32.mrb[7].mxu0  ;;  %v1437_v59 = vadd.f32 %v1055_v50, %v1407_v25  ;;  %v928_v20 = vmul.f32 -1.442695, %v1456_v12 }
  0xe9   :  { %v236_v53 = vpop.f32.mrb[7].mxu1  ;;  %1164 = vpow2.f32 %v920_v49  ;;  %v1448_v6 = vadd.f32 %v1407_v25, %v196_v52 }
  0xea   :  { %v1155_v54 = vpop.eup %1154  ;;  %v923_v2 = vmul.f32 -1.442695, %v1437_v59  ;;  %v1467_v21 = vadd.f32 %v1407_v25, %v236_v53 }
  0xeb   :  { %v294_v55 = vadd.f32 1.0, %v1155_v54  ;;  %v1157_v56 = vpop.eup %1156  ;;  %v922_v13 = vmul.f32 -1.442695, %v1448_v6 }
  0xec   :  { %v293_v58 = vadd.f32 1.0, %v1157_v56 }
  0xed   :  { %1166 = vrcp.f32 %v294_v55 }
  0xee   :  { %v1159_v60 = vpop.eup %1158  ;;  %1168 = vrcp.f32 %v293_v58 }
  0xef   :  { %v296_v61 = vadd.f32 1.0, %v1159_v60  ;;  %v1161_v62 = vpop.eup %1160 }
  0xf0   :  { %v295_v1 = vadd.f32 1.0, %v1161_v62 }
  0xf1   :  { %1170 = vrcp.f32 %v296_v61 }
  0xf2   :  { %v1163_v3 = vpop.eup %1162  ;;  %1172 = vrcp.f32 %v295_v1 }
  0xf3   :  { %v298_v5 = vadd.f32 1.0, %v1163_v3  ;;  %v1165_v7 = vpop.eup %1164  ;;  %1174 = vpow2.f32 %v924_v63 }
  0xf4   :  { %v297_v9 = vadd.f32 1.0, %v1165_v7  ;;  %1176 = vpow2.f32 %v923_v2 }
  0xf5   :  { %1178 = vrcp.f32 %v298_v5 }
  0xf6   :  { %1180 = vrcp.f32 %v297_v9 }
  0xf7   :  { %v1167_v14 = vpop.eup %1166  ;;  %1182 = vpow2.f32 %v925_v8 }
  0xf8   :  { %v1169_v15 = vpop.eup %1168  ;;  %1184 = vpow2.f32 %v926_v11  ;;  %v342_v19 = vmul.f32 %v1167_v14, %v1410_v28  ;;  %v1474_v28 = vadd.f32 %v1067_v51, %v1407_v25  ;;  %v675_v11 = vld [vmem:[%s1661_s5 + $0x8] sm:$0xff]  ;;  %v677_v14 = vld [vmem:[%s1661_s5 + $0x18] sm:$0xff] }
  0xf9   :  { %v341_v16 = vmul.f32 %v1169_v15, %v1413_v31  ;;  %1186 = vpow2.f32 %v922_v13  ;;  %v930_v31 = vmul.f32 -1.442695, %v1467_v21  ;;  %v676_v13 = vld [vmem:[%s1661_s5 + $0x10] sm:$0xff] }
  0xfa   :  { %1188 = vpow2.f32 %v927_v17  ;;  %v931_v37 = vmul.f32 -1.442695, %v1474_v28  ;;  %v1148_v15 = vpack.c.bf16 %v677_v14, %v676_v13 }
  0xfb   :  { %v1171_v22 = vpop.eup %1170  ;;  %1076 = vmatprep.mubr.msk.f32.mxu1 %vm368_vm1, %v341_v16  ;;  %1190 = vpow2.f32 %v928_v20  ;;  %v1520_v16 = vld [vmem:[%s1662_s4] ss:$0 sm:$0xff] }
  0xfc   :  { %v1173_v23 = vpop.eup %1172  ;;  %1077 = vmatmul.mubr.msk.f32.vlgmr.msra.gmra.mrb[8].mxu1 %vm368_vm1, %v342_v19  ;;  %v344_v30 = vmul.f32 %v1171_v22, %v1418_v36  ;;  %1192 = vpow2.f32 %v929_v27 }
  0xfd   :  { %v1175_v24 = vpop.eup %1174  ;;  %v343_v26 = vmul.f32 %v1173_v23, %v1421_v39  ;;  %1194 = vpow2.f32 %v930_v31 }
  0xfe   :  { %v1177_v29 = vpop.eup %1176  ;;  %v301_v34 = vadd.f32 1.0, %v1175_v24 }
  0xff   :  { %v1179_v32 = vpop.eup %1178  ;;  %1079 = vmatprep.mubr.msk.f32.mxu1 %vm368_vm1, %v343_v26  ;;  %v300_v39 = vadd.f32 1.0, %v1177_v29 }
 0x100   :  { %v1181_v33 = vpop.eup %1180  ;;  %1080 = vmatmul.mubr.msk.f32.gmra.mrb[10].mxu1 %vm368_vm1, %v344_v30  ;;  %v346_v38 = vmul.f32 %v1179_v32, %v1426_v44  ;;  %1196 = vrcp.f32 %v301_v34 }
 0x101   :  { %v345_v35 = vmul.f32 %v1181_v33, %v1429_v47  ;;  %v1183_v25 = vpop.eup %1182  ;;  %1198 = vpow2.f32 %v931_v37 }
 0x102   :  { %v1185_v36 = vpop.eup %1184  ;;  %v302_v42 = vadd.f32 1.0, %v1183_v25  ;;  %1200 = vrcp.f32 %v300_v39 }
 0x103   :  { %1082 = vmatprep.mubr.msk.f32.mxu1 %vm368_vm1, %v345_v35  ;;  %v1187_v40 = vpop.eup %1186  ;;  %v303_v45 = vadd.f32 1.0, %v1185_v36 }
 0x104   :  { %1083 = vmatmul.mubr.msk.f32.gmra.mrb[12].mxu1 %vm368_vm1, %v346_v38  ;;  %v299_v41 = vadd.f32 1.0, %v1187_v40  ;;  %v1189_v43 = vpop.eup %1188 }
 0x105   :  { %v1191_v46 = vpop.eup %1190  ;;  %v304_v47 = vadd.f32 1.0, %v1189_v43 }
 0x106   :  { %1202 = vrcp.f32 %v299_v41  ;;  %v1193_v44 = vpop.eup %1192  ;;  %v305_v48 = vadd.f32 1.0, %v1191_v46 }
 0x107   :  { %1204 = vrcp.f32 %v302_v42  ;;  %v1195_v49 = vpop.eup %1194  ;;  %v306_v51 = vadd.f32 1.0, %v1193_v44 }
 0x108   :  { %1206 = vrcp.f32 %v303_v45  ;;  %v307_v53 = vadd.f32 1.0, %v1195_v49 }
 0x109   :  { %1208 = vrcp.f32 %v304_v47 }
 0x10a   :  { %v1197_v50 = vpop.eup %1196  ;;  %1210 = vrcp.f32 %v305_v48 }
 0x10b   :  { %v1199_v52 = vpop.eup %1198  ;;  %1212 = vrcp.f32 %v306_v51  ;;  %v349_v62 = vmul.f32 %v1197_v50, %v1434_v57 }
 0x10c   :  { %v1201_v54 = vpop.eup %1200  ;;  %v308_v56 = vadd.f32 1.0, %v1199_v52  ;;  %1214 = vrcp.f32 %v307_v53 }
 0x10d   :  { %v348_v60 = vmul.f32 %v1201_v54, %v1437_v59 }
 0x10e   :  { %1216 = vrcp.f32 %v308_v56 }
 0x110   :  { %v1203_v55 = vpop.eup %1202 }
 0x111   :  { %v347_v58 = vmul.f32 %v1203_v55, %v1448_v6  ;;  %v1205_v61 = vpop.eup %1204 }
 0x112   :  { %v1207_v63 = vpop.eup %1206  ;;  %v350_v1 = vmul.f32 %v1205_v61, %v1441_v0 }
 0x113   :  { %1085 = vmatprep.mubr.msk.f32.mxu1 %vm368_vm1, %v347_v58  ;;  %v1209_v2 = vpop.eup %1208  ;;  %v351_v3 = vmul.f32 %v1207_v63, %v1445_v4 }
 0x114   :  { %1086 = vmatmul.mubr.msk.f32.gmra.mrb[14].mxu1 %vm368_vm1, %v348_v60  ;;  %v1211_v5 = vpop.eup %1210  ;;  %v352_v57 = vmul.f32 %v1209_v2, %v1452_v10  ;;  %v674_v10 = vld [vmem:[%s1661_s5] sm:$0xff] }
 0x115   :  { %1088 = vmatprep.mubr.msk.f32.mxu1 %vm368_vm1, %v349_v62  ;;  %v1213_v59 = vpop.eup %1212  ;;  %v353_v6 = vmul.f32 %v1211_v5, %v1456_v12  ;;  %v1144_v12 = vpack.c.bf16 %v675_v11, %v674_v10 }
 0x116   :  { %v1215_v7 = vpop.eup %1214  ;;  %v354_v0 = vmul.f32 %v1213_v59, %v1462_v18 }
 0x117   :  { %v355_v4 = vmul.f32 %v1215_v7, %v1467_v21  ;;  %1145 = vmatprep.subr.bf16.mxu0 %v1144_v12 }
 0x118   :  { %1089 = vmatmul.mubr.msk.f32.gmra.mrb[16].mxu1 %vm368_vm1, %v350_v1  ;;  %v1217_v8 = vpop.eup %1216  ;;  %1147 = vmatpush3.bf16.msra.mxu0 %v1144_v12 }
 0x119   :  { %1091 = vmatprep.mubr.msk.f32.mxu1 %vm368_vm1, %v351_v3  ;;  %v356_v9 = vmul.f32 %v1217_v8, %v1474_v28  ;;  %1149 = vmatprep.subr.bf16.mxu0 %v1148_v15 }
 0x11c   :  { %1092 = vmatmul.mubr.msk.f32.gmra.mrb[18].mxu1 %vm368_vm1, %v352_v57  ;;  %1151 = vmatpush3.bf16.msra.mxu0 %v1148_v15 }
 0x11d   :  { %1094 = vmatprep.mubr.msk.f32.mxu1 %vm368_vm1, %v353_v6 }
 0x120   :  { %1095 = vmatmul.mubr.msk.f32.gmra.mrb[20].mxu1 %vm368_vm1, %v354_v0 }
 0x121   :  { %1097 = vmatprep.mubr.msk.f32.mxu1 %vm368_vm1, %v355_v4 }
 0x124   :  { %1098 = vmatmul.mubr.msk.f32.gmra.mrb[22].mxu1 %vm368_vm1, %v356_v9 }
 0x1cf   :  { %v1078_v17 = vpop.f32.mrb[8].mxu1 }
 0x1d0   :  { %v489_v18 = vadd.f32 %v1078_v17, %v1520_v16  ;;  %v483_v19 = vpop.f32.mrb[9].mxu1 }
 0x1d1   :  { %v484_v20 = vadd.f32 %v1520_v16, %v483_v19 }
 0x1d2   :  { %v950_v21 = vmul.f32 -1.442695, %v489_v18 }
 0x1d3   :  { %v949_v22 = vmul.f32 -1.442695, %v484_v20  ;;  %v1081_v23 = vpop.f32.mrb[10].mxu1 }
 0x1d4   :  { %1218 = vpow2.f32 %v950_v21  ;;  %v499_v24 = vadd.f32 %v1081_v23, %v1520_v16  ;;  %v493_v26 = vpop.f32.mrb[11].mxu1 }
 0x1d5   :  { %1220 = vpow2.f32 %v949_v22  ;;  %v494_v27 = vadd.f32 %v1520_v16, %v493_v26 }
 0x1d6   :  { %v952_v28 = vmul.f32 -1.442695, %v499_v24 }
 0x1d7   :  { %v951_v29 = vmul.f32 -1.442695, %v494_v27  ;;  %v1084_v30 = vpop.f32.mrb[12].mxu1 }
 0x1d8   :  { %1222 = vpow2.f32 %v952_v28  ;;  %v1527_v31 = vadd.f32 %v1084_v30, %v1520_v16  ;;  %v503_v32 = vpop.f32.mrb[13].mxu1 }
 0x1d9   :  { %1224 = vpow2.f32 %v951_v29  ;;  %v504_v33 = vadd.f32 %v1520_v16, %v503_v32 }
 0x1da   :  { %v954_v34 = vmul.f32 -1.442695, %v1527_v31 }
 0x1db   :  { %v953_v35 = vmul.f32 -1.442695, %v504_v33 }
 0x1dc   :  { %1226 = vpow2.f32 %v954_v34 }
 0x1dd   :  { %1228 = vpow2.f32 %v953_v35 }
 0x1de   :  { %v1219_v37 = vpop.eup %1218 }
 0x1df   :  { %v1221_v25 = vpop.eup %1220  ;;  %v611_v38 = vadd.f32 1.0, %v1219_v37 }
 0x1e0   :  { %v610_v39 = vadd.f32 1.0, %v1221_v25 }
 0x1e1   :  { %1230 = vrcp.f32 %v611_v38 }
 0x1e2   :  { %v1223_v36 = vpop.eup %1222  ;;  %1232 = vrcp.f32 %v610_v39 }
 0x1e3   :  { %v1225_v40 = vpop.eup %1224  ;;  %v613_v41 = vadd.f32 1.0, %v1223_v36 }
 0x1e4   :  { %v612_v42 = vadd.f32 1.0, %v1225_v40 }
 0x1e5   :  { %1234 = vrcp.f32 %v613_v41 }
 0x1e6   :  { %v1227_v43 = vpop.eup %1226  ;;  %1236 = vrcp.f32 %v612_v42 }
 0x1e7   :  { %v1229_v45 = vpop.eup %1228  ;;  %v615_v46 = vadd.f32 1.0, %v1227_v43  ;;  %v1087_v44 = vpop.f32.mrb[14].mxu1 }
 0x1e8   :  { %v614_v47 = vadd.f32 1.0, %v1229_v45  ;;  %v1532_v48 = vadd.f32 %v1087_v44, %v1520_v16  ;;  %v513_v49 = vpop.f32.mrb[15].mxu1 }
 0x1e9   :  { %1238 = vrcp.f32 %v615_v46  ;;  %v1535_v50 = vadd.f32 %v1520_v16, %v513_v49 }
 0x1ea   :  { %1240 = vrcp.f32 %v614_v47  ;;  %v956_v52 = vmul.f32 -1.442695, %v1532_v48 }
 0x1eb   :  { %v1231_v51 = vpop.eup %1230  ;;  %v955_v54 = vmul.f32 -1.442695, %v1535_v50  ;;  %v1090_v55 = vpop.f32.mrb[16].mxu1 }
 0x1ec   :  { %v1233_v53 = vpop.eup %1232  ;;  %1242 = vpow2.f32 %v956_v52  ;;  %v1540_v58 = vadd.f32 %v1090_v55, %v1520_v16  ;;  %v523_v60 = vpop.f32.mrb[17].mxu1  ;;  %v659_v61 = vmul.f32 %v1231_v51, %v489_v18 }
 0x1ed   :  { %v658_v56 = vmul.f32 %v1233_v53, %v484_v20  ;;  %1244 = vpow2.f32 %v955_v54  ;;  %v1543_v62 = vadd.f32 %v1520_v16, %v523_v60 }
 0x1ee   :  { %v958_v1 = vmul.f32 -1.442695, %v1540_v58 }
 0x1ef   :  { %v1235_v63 = vpop.eup %1234  ;;  %1108 = vmatprep.mubr.msk.f32.mxu0 %vm368_vm1, %v658_v56  ;;  %v957_v3 = vmul.f32 -1.442695, %v1543_v62  ;;  %v1093_v5 = vpop.f32.mrb[18].mxu1 }
 0x1f0   :  { %v1237_v2 = vpop.eup %1236  ;;  %1109 = vmatmul.mubr.msk.f32.vlgmr.msra.gmra.mrb[8].mxu0 %vm368_vm1, %v659_v61  ;;  %1246 = vpow2.f32 %v958_v1  ;;  %v1550_v59 = vadd.f32 %v1093_v5, %v1520_v16  ;;  %v533_v6 = vpop.f32.mrb[19].mxu1  ;;  %v661_v7 = vmul.f32 %v1235_v63, %v499_v24  ;;  %v965_v5 = vld [vmem:[%s1663_s6] ss:$0 sm:$0xff] }
 0x1f1   :  { %v660_v57 = vmul.f32 %v1237_v2, %v494_v27  ;;  %1248 = vpow2.f32 %v957_v3  ;;  %v1553_v0 = vadd.f32 %v1520_v16, %v533_v6 }
 0x1f2   :  { %v960_v4 = vmul.f32 -1.442695, %v1550_v59 }
 0x1f3   :  { %v1239_v8 = vpop.eup %1238  ;;  %1111 = vmatprep.mubr.msk.f32.mxu0 %vm368_vm1, %v660_v57  ;;  %v959_v10 = vmul.f32 -1.442695, %v1553_v0  ;;  %v1096_v11 = vpop.f32.mrb[20].mxu1 }
 0x1f4   :  { %v1241_v9 = vpop.eup %1240  ;;  %1112 = vmatmul.mubr.msk.f32.gmra.mrb[10].mxu0 %vm368_vm1, %v661_v7  ;;  %1250 = vpow2.f32 %v960_v4  ;;  %v1560_v13 = vadd.f32 %v1096_v11, %v1520_v16  ;;  %v543_v14 = vpop.f32.mrb[21].mxu1  ;;  %v663_v15 = vmul.f32 %v1239_v8, %v1527_v31 }
 0x1f5   :  { %v662_v12 = vmul.f32 %v1241_v9, %v504_v33  ;;  %1252 = vpow2.f32 %v959_v10  ;;  %v1564_v17 = vadd.f32 %v1520_v16, %v543_v14 }
 0x1f6   :  { %v1243_v18 = vpop.eup %1242  ;;  %v962_v19 = vmul.f32 -1.442695, %v1560_v13 }
 0x1f7   :  { %1114 = vmatprep.mubr.msk.f32.mxu0 %vm368_vm1, %v662_v12  ;;  %v1245_v20 = vpop.eup %1244  ;;  %v617_v21 = vadd.f32 1.0, %v1243_v18  ;;  %v961_v22 = vmul.f32 -1.442695, %v1564_v17  ;;  %v1099_v23 = vpop.f32.mrb[22].mxu1 }
 0x1f8   :  { %1115 = vmatmul.mubr.msk.f32.gmra.mrb[12].mxu0 %vm368_vm1, %v663_v15  ;;  %v616_v24 = vadd.f32 1.0, %v1245_v20  ;;  %1254 = vpow2.f32 %v962_v19  ;;  %v559_v26 = vadd.f32 %v1099_v23, %v1520_v16  ;;  %v553_v27 = vpop.f32.mrb[23].mxu1 }
 0x1f9   :  { %1256 = vrcp.f32 %v617_v21  ;;  %v554_v28 = vadd.f32 %v1520_v16, %v553_v27 }
 0x1fa   :  { %v1247_v29 = vpop.eup %1246  ;;  %1258 = vrcp.f32 %v616_v24  ;;  %v964_v30 = vmul.f32 -1.442695, %v559_v26 }
 0x1fb   :  { %v1249_v31 = vpop.eup %1248  ;;  %v619_v32 = vadd.f32 1.0, %v1247_v29  ;;  %1260 = vpow2.f32 %v961_v22  ;;  %v963_v33 = vmul.f32 -1.442695, %v554_v28 }
 0x1fc   :  { %v618_v34 = vadd.f32 1.0, %v1249_v31  ;;  %1262 = vpow2.f32 %v964_v30 }
 0x1fd   :  { %1264 = vrcp.f32 %v619_v32 }
 0x1fe   :  { %v1251_v35 = vpop.eup %1250  ;;  %1266 = vrcp.f32 %v618_v34 }
 0x1ff   :  { %v1253_v37 = vpop.eup %1252  ;;  %v621_v25 = vadd.f32 1.0, %v1251_v35  ;;  %1268 = vpow2.f32 %v963_v33 }
 0x200   :  { %v620_v38 = vadd.f32 1.0, %v1253_v37 }
 0x201   :  { %1270 = vrcp.f32 %v621_v25 }
 0x202   :  { %v1255_v39 = vpop.eup %1254  ;;  %1272 = vrcp.f32 %v620_v38 }
 0x203   :  { %v1257_v16 = vpop.eup %1256  ;;  %v623_v36 = vadd.f32 1.0, %v1255_v39 }
 0x204   :  { %v1259_v40 = vpop.eup %1258  ;;  %v665_v45 = vmul.f32 %v1257_v16, %v1532_v48 }
 0x205   :  { %v1261_v41 = vpop.eup %1260  ;;  %v664_v42 = vmul.f32 %v1259_v40, %v1535_v50  ;;  %1274 = vrcp.f32 %v623_v36 }
 0x206   :  { %v1263_v43 = vpop.eup %1262  ;;  %v622_v46 = vadd.f32 1.0, %v1261_v41 }
 0x207   :  { %v1265_v47 = vpop.eup %1264  ;;  %v625_v44 = vadd.f32 1.0, %v1263_v43  ;;  %1117 = vmatprep.mubr.msk.f32.mxu0 %vm368_vm1, %v664_v42 }
 0x208   :  { %v1267_v49 = vpop.eup %1266  ;;  %1276 = vrcp.f32 %v622_v46  ;;  %1118 = vmatmul.mubr.msk.f32.gmra.mrb[14].mxu0 %vm368_vm1, %v665_v45  ;;  %v667_v53 = vmul.f32 %v1265_v47, %v1540_v58 }
 0x209   :  { %v1269_v51 = vpop.eup %1268  ;;  %v666_v52 = vmul.f32 %v1267_v49, %v1543_v62  ;;  %1278 = vrcp.f32 %v625_v44 }
 0x20a   :  { %v624_v54 = vadd.f32 1.0, %v1269_v51 }
 0x20b   :  { %v1271_v50 = vpop.eup %1270  ;;  %1120 = vmatprep.mubr.msk.f32.mxu0 %vm368_vm1, %v666_v52 }
 0x20c   :  { %v1273_v48 = vpop.eup %1272  ;;  %1280 = vrcp.f32 %v624_v54  ;;  %1121 = vmatmul.mubr.msk.f32.gmra.mrb[16].mxu0 %vm368_vm1, %v667_v53  ;;  %v669_v56 = vmul.f32 %v1271_v50, %v1550_v59 }
 0x20d   :  { %v668_v55 = vmul.f32 %v1273_v48, %v1553_v0 }
 0x20f   :  { %1123 = vmatprep.mubr.msk.f32.mxu0 %vm368_vm1, %v668_v55  ;;  %v1275_v60 = vpop.eup %1274 }
 0x210   :  { %1124 = vmatmul.mubr.msk.f32.gmra.mrb[18].mxu0 %vm368_vm1, %v669_v56  ;;  %v671_v62 = vmul.f32 %v1275_v60, %v1560_v13 }
 0x212   :  { %v1277_v61 = vpop.eup %1276 }
 0x213   :  { %v670_v58 = vmul.f32 %v1277_v61, %v1564_v17  ;;  %v1279_v63 = vpop.eup %1278 }
 0x214   :  { %v673_v3 = vmul.f32 %v1279_v63, %v559_v26 }
 0x215   :  { %1126 = vmatprep.mubr.msk.f32.mxu0 %vm368_vm1, %v670_v58 }
 0x216   :  { %v1281_v1 = vpop.eup %1280  ;;  %1127 = vmatmul.mubr.msk.f32.gmra.mrb[20].mxu0 %vm368_vm1, %v671_v62 }
 0x217   :  { %v672_v2 = vmul.f32 %v1281_v1, %v554_v28 }
 0x219   :  { %1129 = vmatprep.mubr.msk.f32.mxu0 %vm368_vm1, %v672_v2 }
 0x21a   :  { %1130 = vmatmul.mubr.msk.f32.gmra.mrb[22].mxu0 %vm368_vm1, %v673_v3 }
 0x2c3   :  { %v1110_v57 = vpop.f32.mrb[8].mxu0 }
 0x2c4   :  { %v805_v59 = vadd.f32 %v1110_v57, %v965_v5  ;;  %v799_v6 = vpop.f32.mrb[9].mxu0 }
 0x2c5   :  { %v800_v7 = vadd.f32 %v965_v5, %v799_v6 }
 0x2c6   :  { %880 = vst.msk [vmem:[%s1664_s7 + $0x8] sm:$0xff] %vm878_vm2, %v805_v59 }
 0x2c7   :  { %879 = vst.msk [vmem:[%s1664_s7] sm:$0xff] %vm878_vm2, %v800_v7  ;;  %v1113_v0 = vpop.f32.mrb[10].mxu0 }
 0x2c8   :  { %v815_v8 = vadd.f32 %v1113_v0, %v965_v5  ;;  %v809_v4 = vpop.f32.mrb[11].mxu0 }
 0x2c9   :  { %v810_v9 = vadd.f32 %v965_v5, %v809_v4 }
 0x2ca   :  { %882 = vst.msk [vmem:[%s1664_s7 + $0x18] sm:$0xff] %vm878_vm2, %v815_v8 }
 0x2cb   :  { %881 = vst.msk [vmem:[%s1664_s7 + $0x10] sm:$0xff] %vm878_vm2, %v810_v9  ;;  %v1116_v10 = vpop.f32.mrb[12].mxu0 }
 0x2cc   :  { %v825_v11 = vadd.f32 %v1116_v10, %v965_v5  ;;  %v819_v12 = vpop.f32.mrb[13].mxu0 }
 0x2cd   :  { %v820_v13 = vadd.f32 %v965_v5, %v819_v12 }
 0x2ce   :  { %884 = vst.msk [vmem:[%s1664_s7 + $0x28] sm:$0xff] %vm878_vm2, %v825_v11 }
 0x2cf   :  { %883 = vst.msk [vmem:[%s1664_s7 + $0x20] sm:$0xff] %vm878_vm2, %v820_v13 }
 0x2db   :  { %v1119_v14 = vpop.f32.mrb[14].mxu0 }
 0x2dc   :  { %v835_v15 = vadd.f32 %v1119_v14, %v965_v5  ;;  %v829_v17 = vpop.f32.mrb[15].mxu0 }
 0x2dd   :  { %v830_v18 = vadd.f32 %v965_v5, %v829_v17 }
 0x2de   :  { %886 = vst.msk [vmem:[%s1664_s7 + $0x38] sm:$0xff] %vm878_vm2, %v835_v15 }
 0x2df   :  { %885 = vst.msk [vmem:[%s1664_s7 + $0x30] sm:$0xff] %vm878_vm2, %v830_v18  ;;  %v1122_v19 = vpop.f32.mrb[16].mxu0 }
 0x2e0   :  { %v845_v20 = vadd.f32 %v1122_v19, %v965_v5  ;;  %v839_v21 = vpop.f32.mrb[17].mxu0 }
 0x2e1   :  { %v840_v22 = vadd.f32 %v965_v5, %v839_v21 }
 0x2e2   :  { %888 = vst.msk [vmem:[%s1664_s7 + $0x48] sm:$0xff] %vm878_vm2, %v845_v20 }
 0x2e3   :  { %887 = vst.msk [vmem:[%s1664_s7 + $0x40] sm:$0xff] %vm878_vm2, %v840_v22  ;;  %v1125_v23 = vpop.f32.mrb[18].mxu0 }
 0x2e4   :  { %v855_v24 = vadd.f32 %v1125_v23, %v965_v5  ;;  %v849_v26 = vpop.f32.mrb[19].mxu0 }
 0x2e5   :  { %v850_v27 = vadd.f32 %v965_v5, %v849_v26 }
 0x2e6   :  { %890 = vst.msk [vmem:[%s1664_s7 + $0x58] sm:$0xff] %vm878_vm2, %v855_v24 }
 0x2e7   :  { %889 = vst.msk [vmem:[%s1664_s7 + $0x50] sm:$0xff] %vm878_vm2, %v850_v27 }
 0x2e9   :  { %v1128_v28 = vpop.f32.mrb[20].mxu0 }
 0x2ea   :  { %v865_v29 = vadd.f32 %v1128_v28, %v965_v5  ;;  %v859_v30 = vpop.f32.mrb[21].mxu0 }
 0x2eb   :  { %v860_v31 = vadd.f32 %v965_v5, %v859_v30 }
 0x2ec   :  { %892 = vst.msk [vmem:[%s1664_s7 + $0x68] sm:$0xff] %vm878_vm2, %v865_v29 }
 0x2ed   :  { %891 = vst.msk [vmem:[%s1664_s7 + $0x60] sm:$0xff] %vm878_vm2, %v860_v31  ;;  %v1131_v32 = vpop.f32.mrb[22].mxu0 }
 0x2ee   :  { %v875_v33 = vadd.f32 %v1131_v32, %v965_v5  ;;  %v869_v34 = vpop.f32.mrb[23].mxu0 }
 0x2ef   :  { %v870_v35 = vadd.f32 %v965_v5, %v869_v34 }
 0x2f0   :  { %894 = vst.msk [vmem:[%s1664_s7 + $0x78] sm:$0xff] %vm878_vm2, %v875_v33 }
 0x2f1   :  { %893 = vst.msk [vmem:[%s1664_s7 + $0x70] sm:$0xff] %vm878_vm2, %v870_v35 }

</bundles_post_ra>
